<compile_context>
chip_gen: v6e
topology: v6e:2x2x1
jax: 0.10.0
libtpu: 0.0.40
codegen_flags: <defaults>
</compile_context>

<pallas_src>
import functools

import jax
import jax.numpy as jnp
from jax.experimental import pallas as pl
from jax.experimental.pallas import tpu as pltpu

BN_EPS = 1e-5        # torch.nn.BatchNorm1d default eps
_LANE = 128          # lane width (last dim); 256 pays off on v6e/v7x for big dims
_SUBL_BF16 = 16      # bf16 sublane packing for the MXU LHS (batch dim)


def _ru(x, m):
    """Round x up to a multiple of m."""
    return ((x + m - 1) // m) * m


def _pad2d(a, rows, cols):
    """Zero-pad a 2D array up to (rows, cols)."""
    r, c = a.shape
    if r == rows and c == cols:
        return a
    return jnp.pad(a, ((0, rows - r), (0, cols - c)))


# ---------------------------------------------------------------------------
# Fused kernel: entire MLP forward in one pallas_call (no grid, all in VMEM)
# ---------------------------------------------------------------------------
def _fused_mlp_kernel(*refs, num_layers, n_true, out_true, mask_rows, mask_cols):
    """refs = [x_ref(bf16),
               (w(bf16), gamma(f32), beta(f32)) * (num_layers - 1),
               w_last(bf16), b_last(f32),
               o_ref(f32)]
    All refs hold lane/sublane-padded arrays resident in VMEM.
    """
    x_ref = refs[0]
    o_ref = refs[-1]
    params = refs[1:-1]

    x = x_ref[...]                                   # (N_pad, IN_pad) bf16
    n_pad = x.shape[0]
    inv_n = jnp.float32(1.0 / float(n_true))

    if mask_rows:
        # Padded batch rows must not pollute the BatchNorm statistics.
        row_ids = jax.lax.broadcasted_iota(jnp.int32, (n_pad, 1), 0)
        row_mask = (row_ids < n_true).astype(jnp.float32)

    idx = 0
    # ---- hidden layers: Linear -> BatchNorm (batch stats) -> ReLU ----------
    for _ in range(num_layers - 1):
        w = params[idx][...]                         # bf16 (K_pad, H_pad)
        g = params[idx + 1][...]                     # f32  (1, H_pad)
        beta = params[idx + 2][...]                  # f32  (1, H_pad)
        idx += 3

        # MXU matmul: bf16 operands, f32 accumulate.
        y = jnp.dot(x, w, preferred_element_type=jnp.float32)
        # Hidden-layer Linear bias omitted on purpose: it cancels exactly under
        # training-mode BatchNorm (mean absorbs it, shift = beta - mean*scale).

        # BatchNorm1d, training-mode (biased) batch statistics, single pass.
        if mask_rows:
            ym = y * row_mask
            mean = jnp.sum(ym, axis=0, keepdims=True) * inv_n
            ex2 = jnp.sum(ym * y, axis=0, keepdims=True) * inv_n
        else:
            mean = jnp.sum(y, axis=0, keepdims=True) * inv_n
            ex2 = jnp.sum(y * y, axis=0, keepdims=True) * inv_n
        var = ex2 - mean * mean
        scale = g * jax.lax.rsqrt(var + BN_EPS)      # fused gamma * rsqrt
        shift = beta - mean * scale
        y = y * scale + shift

        x = jnp.maximum(y, 0.0).astype(jnp.bfloat16)  # ReLU, re-pack for next MXU op
        # Dropout: identity (eval-mode semantics).
        # TODO(synk): training-mode stochastic dropout via
        #             pltpu.prng_seed + pltpu.prng_random_bits.

    # ---- last layer: Linear (+bias) -> masked log_softmax -------------------
    w = params[idx][...]                             # bf16 (H_pad, OUT_pad)
    b = params[idx + 1][...]                         # f32  (1, OUT_pad)
    y = jnp.dot(x, w, preferred_element_type=jnp.float32) + b

    if mask_cols:
        o_pad = y.shape[-1]
        col_ids = jax.lax.broadcasted_iota(jnp.int32, (1, o_pad), 1)
        y = jnp.where(col_ids < out_true, y, jnp.full_like(y, -1e30))

    m = jnp.max(y, axis=-1, keepdims=True)
    z = y - m
    # Padded logits sit at ~-1e30, so exp underflows to 0: no extra select needed.
    lse = jnp.log(jnp.sum(jnp.exp(z), axis=-1, keepdims=True))
    o_ref[...] = z - lse


# ---------------------------------------------------------------------------
# Wrapper: host-side padding + bf16 cast, single no-grid pallas_call
# ---------------------------------------------------------------------------
def mlp_forward(x, lin_params, bn_params, dropout_p=0.0):
    """Functional equivalent of MLP.forward (batchnorm=True).

    BatchNorm uses batch statistics (training-mode normalization); dropout is
    an identity (see TODO inside the kernel).  MXU operands are bf16 with f32
    accumulation; BN / softmax math is f32."""
    del dropout_p
    num_layers = len(lin_params)
    assert len(bn_params) == num_layers - 1

    n_true, in_true = x.shape
    out_true = lin_params[-1][0].shape[1]

    n_pad = _ru(n_true, _SUBL_BF16)
    in_pad = _ru(in_true, _LANE)
    out_pad = _ru(out_true, _LANE)

    # Host-side pad + bf16 cast for MXU operands (halves DMA bytes / residency).
    x_p = _pad2d(x.astype(jnp.float32), n_pad, in_pad).astype(jnp.bfloat16)

    inputs = [x_p]
    for i, (w, b) in enumerate(lin_params):
        din, dout = w.shape
        w_p = _pad2d(w.astype(jnp.float32),
                     _ru(din, _LANE), _ru(dout, _LANE)).astype(jnp.bfloat16)
        inputs.append(w_p)
        if i < num_layers - 1:
            # Hidden-layer bias is NOT passed: cancelled by batch-stat BatchNorm.
            g, beta = bn_params[i]
            hp = _ru(dout, _LANE)
            inputs.append(_pad2d(g.astype(jnp.float32).reshape(1, -1), 1, hp))
            inputs.append(_pad2d(beta.astype(jnp.float32).reshape(1, -1), 1, hp))
        else:
            inputs.append(_pad2d(b.astype(jnp.float32).reshape(1, -1), 1, out_pad))

    kernel = functools.partial(
        _fused_mlp_kernel,
        num_layers=num_layers,
        n_true=n_true,
        out_true=out_true,
        mask_rows=(n_pad != n_true),
        mask_cols=(out_pad != out_true),
    )

    # No grid + memory_space=VMEM: every operand is resident once in VMEM with
    # no revolving double-buffers (single kernel invocation).
    vmem_spec = pl.BlockSpec(memory_space=pltpu.MemorySpace.VMEM)
    out = pl.pallas_call(
        kernel,
        out_shape=jax.ShapeDtypeStruct((n_pad, out_pad), jnp.float32),
        in_specs=[vmem_spec] * len(inputs),
        out_specs=vmem_spec,
        compiler_params=pltpu.CompilerParams(
            vmem_limit_bytes=32 * 1024 * 1024),
    )(*inputs)

    return out[:n_true, :out_true]


# ---------------------------------------------------------------------------
# Parameter init (deterministic, mirrors nn.Linear / nn.BatchNorm1d defaults)
# ---------------------------------------------------------------------------
def init_mlp_params(key, in_channels, hidden_channels, out_channels, num_layers):
    dims = [in_channels] + [hidden_channels] * (num_layers - 1) + [out_channels]
    lin_params = []
    for i in range(num_layers):
        key, kw, kb = jax.random.split(key, 3)
        bound = 1.0 / float(dims[i]) ** 0.5        # torch Linear default init
        w = jax.random.uniform(kw, (dims[i], dims[i + 1]), jnp.float32, -bound, bound)
        b = jax.random.uniform(kb, (1, dims[i + 1]), jnp.float32, -bound, bound)
        lin_params.append((w, b))
    # BatchNorm1d defaults: weight=1, bias=0
    bn_params = [(jnp.ones((1, hidden_channels), jnp.float32),
                  jnp.zeros((1, hidden_channels), jnp.float32))
                 for _ in range(num_layers - 1)]
    return lin_params, bn_params


# ---------------------------------------------------------------------------
# Pure-JAX reference (includes hidden biases; they cancel under batch-stat BN)
# ---------------------------------------------------------------------------
def mlp_reference(x, lin_params, bn_params):
    num_layers = len(lin_params)
    h = x.astype(jnp.float32)
    for i in range(num_layers - 1):
        w, b = lin_params[i]
        h = h @ w + b
        g, beta = bn_params[i]
        mean = jnp.mean(h, axis=0, keepdims=True)
        var = jnp.mean((h - mean) ** 2, axis=0, keepdims=True)
        h = (h - mean) * jax.lax.rsqrt(var + BN_EPS) * g + beta
        h = jnp.maximum(h, 0.0)
    w, b = lin_params[-1]
    h = h @ w + b
    return jax.nn.log_softmax(h, axis=-1)


# ---------------------------------------------------------------------------
if __name__ == "__main__":
    IN_CH = 8
    HIDDEN = 32
    OUT_CH = 10
    NUM_LAYERS = 3
    DROPOUT = 0.5     # identity in this forward (see TODO in kernel)

    key = jax.random.PRNGKey(0)
    key, kx = jax.random.split(key)
    lin_params, bn_params = init_mlp_params(key, IN_CH, HIDDEN, OUT_CH, NUM_LAYERS)

    # N=16 exercises the aligned-batch (no row mask) path; N=12 the masked path.
    for N in (16, 12):
        x = jax.random.normal(jax.random.fold_in(kx, N), (N, IN_CH), jnp.float32)
        out = jax.block_until_ready(mlp_forward(x, lin_params, bn_params, DROPOUT))
        assert out.shape == (N, OUT_CH)
        # exp(log_softmax) rows should sum to ~1
        assert bool(jnp.allclose(jnp.sum(jnp.exp(out), axis=-1), 1.0, atol=1e-3))
        # match the f32 reference up to bf16-matmul tolerance
        ref = mlp_reference(x, lin_params, bn_params)
        assert bool(jnp.allclose(out, ref, atol=0.15, rtol=0.05))

    print("KERNEL_OK")
</pallas_src>

<mosaic_0001>
module attributes {stable_mosaic.version = 11 : i64} {
  func.func @_fused_mlp_kernel(%arg0: memref<16x128xbf16, #tpu.memory_space<vmem>>, %arg1: memref<128x128xbf16, #tpu.memory_space<vmem>>, %arg2: memref<1x128xf32, #tpu.memory_space<vmem>>, %arg3: memref<1x128xf32, #tpu.memory_space<vmem>>, %arg4: memref<128x128xbf16, #tpu.memory_space<vmem>>, %arg5: memref<1x128xf32, #tpu.memory_space<vmem>>, %arg6: memref<1x128xf32, #tpu.memory_space<vmem>>, %arg7: memref<128x128xbf16, #tpu.memory_space<vmem>>, %arg8: memref<1x128xf32, #tpu.memory_space<vmem>>, %arg9: memref<16x128xf32, #tpu.memory_space<vmem>>) attributes {dimension_semantics = [], scalar_prefetch = 0 : i64, scratch_operands = 0 : i64, tpu.core_type = #tpu.core_type<tc>} {
    %c0 = arith.constant 0 : index
    %c0_0 = arith.constant 0 : index
    %0 = vector.load %arg0[%c0, %c0_0] : memref<16x128xbf16, #tpu.memory_space<vmem>>, vector<16x128xbf16>
    %c0_1 = arith.constant 0 : index
    %c0_2 = arith.constant 0 : index
    %1 = vector.load %arg1[%c0_1, %c0_2] : memref<128x128xbf16, #tpu.memory_space<vmem>>, vector<128x128xbf16>
    %c0_3 = arith.constant 0 : index
    %c0_4 = arith.constant 0 : index
    %2 = vector.load %arg2[%c0_3, %c0_4] : memref<1x128xf32, #tpu.memory_space<vmem>>, vector<1x128xf32>
    %c0_5 = arith.constant 0 : index
    %c0_6 = arith.constant 0 : index
    %3 = vector.load %arg3[%c0_5, %c0_6] : memref<1x128xf32, #tpu.memory_space<vmem>>, vector<1x128xf32>
    %cst = arith.constant dense<0.000000e+00> : vector<16x128xf32>
    %4 = tpu.matmul %0, %1, %cst {dimension_numbers = #tpu.dot_dimension_numbers<[1], [0], [0], [1], [0, 0, 1, 1], [], []>} : vector<16x128xbf16>, vector<128x128xbf16>, vector<16x128xf32> -> vector<16x128xf32>
    %cst_7 = arith.constant dense<0.000000e+00> : vector<128xf32>
    %5 = vector.multi_reduction <add>, %4, %cst_7 [0] : vector<16x128xf32> to vector<128xf32>
    %6 = vector.shape_cast %5 : vector<128xf32> to vector<1x128xf32>
    %cst_8 = arith.constant 6.250000e-02 : f32
    %7 = vector.broadcast %cst_8 : f32 to vector<1x128xf32>
    %8 = arith.mulf %6, %7 : vector<1x128xf32>
    %9 = arith.mulf %4, %4 : vector<16x128xf32>
    %cst_9 = arith.constant dense<0.000000e+00> : vector<128xf32>
    %10 = vector.multi_reduction <add>, %9, %cst_9 [0] : vector<16x128xf32> to vector<128xf32>
    %11 = vector.shape_cast %10 : vector<128xf32> to vector<1x128xf32>
    %cst_10 = arith.constant 6.250000e-02 : f32
    %12 = vector.broadcast %cst_10 : f32 to vector<1x128xf32>
    %13 = arith.mulf %11, %12 : vector<1x128xf32>
    %14 = arith.mulf %8, %8 : vector<1x128xf32>
    %15 = arith.subf %13, %14 : vector<1x128xf32>
    %cst_11 = arith.constant 9.99999974E-6 : f32
    %16 = vector.broadcast %cst_11 : f32 to vector<1x128xf32>
    %17 = arith.addf %15, %16 : vector<1x128xf32>
    %18 = math.rsqrt %17 : vector<1x128xf32>
    %19 = arith.mulf %2, %18 : vector<1x128xf32>
    %20 = arith.mulf %8, %19 : vector<1x128xf32>
    %21 = arith.subf %3, %20 : vector<1x128xf32>
    %22 = vector.broadcast %19 : vector<1x128xf32> to vector<16x128xf32>
    %23 = arith.mulf %4, %22 : vector<16x128xf32>
    %24 = vector.broadcast %21 : vector<1x128xf32> to vector<16x128xf32>
    %25 = arith.addf %23, %24 : vector<16x128xf32>
    %cst_12 = arith.constant 0.000000e+00 : f32
    %26 = vector.broadcast %cst_12 : f32 to vector<16x128xf32>
    %27 = arith.maximumf %25, %26 : vector<16x128xf32>
    %28 = arith.truncf %27 : vector<16x128xf32> to vector<16x128xbf16>
    %c0_13 = arith.constant 0 : index
    %c0_14 = arith.constant 0 : index
    %29 = vector.load %arg4[%c0_13, %c0_14] : memref<128x128xbf16, #tpu.memory_space<vmem>>, vector<128x128xbf16>
    %c0_15 = arith.constant 0 : index
    %c0_16 = arith.constant 0 : index
    %30 = vector.load %arg5[%c0_15, %c0_16] : memref<1x128xf32, #tpu.memory_space<vmem>>, vector<1x128xf32>
    %c0_17 = arith.constant 0 : index
    %c0_18 = arith.constant 0 : index
    %31 = vector.load %arg6[%c0_17, %c0_18] : memref<1x128xf32, #tpu.memory_space<vmem>>, vector<1x128xf32>
    %cst_19 = arith.constant dense<0.000000e+00> : vector<16x128xf32>
    %32 = tpu.matmul %28, %29, %cst_19 {dimension_numbers = #tpu.dot_dimension_numbers<[1], [0], [0], [1], [0, 0, 1, 1], [], []>} : vector<16x128xbf16>, vector<128x128xbf16>, vector<16x128xf32> -> vector<16x128xf32>
    %cst_20 = arith.constant dense<0.000000e+00> : vector<128xf32>
    %33 = vector.multi_reduction <add>, %32, %cst_20 [0] : vector<16x128xf32> to vector<128xf32>
    %34 = vector.shape_cast %33 : vector<128xf32> to vector<1x128xf32>
    %cst_21 = arith.constant 6.250000e-02 : f32
    %35 = vector.broadcast %cst_21 : f32 to vector<1x128xf32>
    %36 = arith.mulf %34, %35 : vector<1x128xf32>
    %37 = arith.mulf %32, %32 : vector<16x128xf32>
    %cst_22 = arith.constant dense<0.000000e+00> : vector<128xf32>
    %38 = vector.multi_reduction <add>, %37, %cst_22 [0] : vector<16x128xf32> to vector<128xf32>
    %39 = vector.shape_cast %38 : vector<128xf32> to vector<1x128xf32>
    %cst_23 = arith.constant 6.250000e-02 : f32
    %40 = vector.broadcast %cst_23 : f32 to vector<1x128xf32>
    %41 = arith.mulf %39, %40 : vector<1x128xf32>
    %42 = arith.mulf %36, %36 : vector<1x128xf32>
    %43 = arith.subf %41, %42 : vector<1x128xf32>
    %cst_24 = arith.constant 9.99999974E-6 : f32
    %44 = vector.broadcast %cst_24 : f32 to vector<1x128xf32>
    %45 = arith.addf %43, %44 : vector<1x128xf32>
    %46 = math.rsqrt %45 : vector<1x128xf32>
    %47 = arith.mulf %30, %46 : vector<1x128xf32>
    %48 = arith.mulf %36, %47 : vector<1x128xf32>
    %49 = arith.subf %31, %48 : vector<1x128xf32>
    %50 = vector.broadcast %47 : vector<1x128xf32> to vector<16x128xf32>
    %51 = arith.mulf %32, %50 : vector<16x128xf32>
    %52 = vector.broadcast %49 : vector<1x128xf32> to vector<16x128xf32>
    %53 = arith.addf %51, %52 : vector<16x128xf32>
    %cst_25 = arith.constant 0.000000e+00 : f32
    %54 = vector.broadcast %cst_25 : f32 to vector<16x128xf32>
    %55 = arith.maximumf %53, %54 : vector<16x128xf32>
    %56 = arith.truncf %55 : vector<16x128xf32> to vector<16x128xbf16>
    %c0_26 = arith.constant 0 : index
    %c0_27 = arith.constant 0 : index
    %57 = vector.load %arg7[%c0_26, %c0_27] : memref<128x128xbf16, #tpu.memory_space<vmem>>, vector<128x128xbf16>
    %c0_28 = arith.constant 0 : index
    %c0_29 = arith.constant 0 : index
    %58 = vector.load %arg8[%c0_28, %c0_29] : memref<1x128xf32, #tpu.memory_space<vmem>>, vector<1x128xf32>
    %cst_30 = arith.constant dense<0.000000e+00> : vector<16x128xf32>
    %59 = tpu.matmul %56, %57, %cst_30 {dimension_numbers = #tpu.dot_dimension_numbers<[1], [0], [0], [1], [0, 0, 1, 1], [], []>} : vector<16x128xbf16>, vector<128x128xbf16>, vector<16x128xf32> -> vector<16x128xf32>
    %60 = vector.broadcast %58 : vector<1x128xf32> to vector<16x128xf32>
    %61 = arith.addf %59, %60 : vector<16x128xf32>
    %62 = tpu.iota {dimensions = array<i32: 1>} : vector<1x128xi32>
    %c10_i32 = arith.constant 10 : i32
    %63 = vector.broadcast %c10_i32 : i32 to vector<1x128xi32>
    %64 = arith.cmpi slt, %62, %63 : vector<1x128xi32>
    %cst_31 = arith.constant -1.000000e+30 : f32
    %65 = vector.broadcast %cst_31 : f32 to vector<16x128xf32>
    %66 = vector.shape_cast %64 : vector<1x128xi1> to vector<1x128xi1>
    %67 = vector.broadcast %66 : vector<1x128xi1> to vector<16x128xi1>
    %68 = arith.select %67, %61, %65 : vector<16x128xi1>, vector<16x128xf32>
    %cst_32 = arith.constant dense<0xFF800000> : vector<16xf32>
    %69 = vector.multi_reduction <maximumf>, %68, %cst_32 [1] : vector<16x128xf32> to vector<16xf32>
    %70 = vector.shape_cast %69 : vector<16xf32> to vector<16x1xf32>
    %71 = vector.broadcast %70 : vector<16x1xf32> to vector<16x128xf32>
    %72 = arith.subf %68, %71 : vector<16x128xf32>
    %73 = math.exp %72 : vector<16x128xf32>
    %cst_33 = arith.constant dense<0.000000e+00> : vector<16xf32>
    %74 = vector.multi_reduction <add>, %73, %cst_33 [1] : vector<16x128xf32> to vector<16xf32>
    %75 = vector.shape_cast %74 : vector<16xf32> to vector<16x1xf32>
    %76 = math.log %75 : vector<16x1xf32>
    %77 = vector.broadcast %76 : vector<16x1xf32> to vector<16x128xf32>
    %78 = arith.subf %72, %77 : vector<16x128xf32>
    %c0_34 = arith.constant 0 : index
    %c0_35 = arith.constant 0 : index
    %79 = vector.load %arg9[%c0_34, %c0_35] : memref<16x128xf32, #tpu.memory_space<vmem>>, vector<16x128xf32>
    tpu.vector_store %arg9[%c0_34, %c0_35], %78 {strides = array<i32>} : memref<16x128xf32, #tpu.memory_space<vmem>>, vector<16x128xf32>,
    return
  }
}

</mosaic_0001>

<bundles_post_ra>
// kernel: tpu_custom_call.1
= control target key start
LH: loop header
LB: loop body
LE: loop exit
PB: predicated region body
PF: predicated region fallthrough
CT: control target
= control target key end

     0   :  { %14 = vsyncpa [#allocation3], 0  ;;  %s969_s0 = inlined_call_operand.hbm [shape: bf16[16,128], index: 0, kind: input, shape index: {}]   ;;  %s970_s1 = inlined_call_operand.hbm [shape: bf16[128,128], index: 1, kind: input, shape index: {}]   ;;  %s971_s2 = inlined_call_operand.vmem [shape: f32[1,128], index: 2, kind: input, shape index: {}]   ;;  %s972_s3 = inlined_call_operand.vmem [shape: f32[1,128], index: 3, kind: input, shape index: {}]   ;;  %s973_s4 = inlined_call_operand.hbm [shape: bf16[128,128], index: 4, kind: input, shape index: {}]   ;;  %s974_s5 = inlined_call_operand.vmem [shape: f32[1,128], index: 5, kind: input, shape index: {}]   ;;  %s975_s6 = inlined_call_operand.vmem [shape: f32[1,128], index: 6, kind: input, shape index: {}]   ;;  %s976_s7 = inlined_call_operand.hbm [shape: bf16[128,128], index: 7, kind: input, shape index: {}]   ;;  %s977_s8 = inlined_call_operand.vmem [shape: f32[1,128], index: 8, kind: input, shape index: {}]   ;;  %s978_s9 = inlined_call_operand.hbm [shape: f32[16,128], index: 9, kind: output, shape index: {}]  }
   0x1   :  { %15 = vsyncpa [#allocation6], 0 }
   0x2   :  { %16 = vsyncpa [#allocation9], 0 }
   0x3   :  { %17 = vsyncpa [#allocation4], 0  ;;  %s828_s30 = smov [#allocation5]   ;;  %s829_s11 = smov [#allocation2]  }
   0x4   :  { %s35_s10 = sshll.u32 %s828_s30, 4  ;;  %s23_s12 = sshll.u32 %s829_s11, 4  ;;  %s36_s10 = int_to_ptr.vmem [resolvable:$true] %s35_s10  ;;  %s24_s12 = int_to_ptr.vmem [resolvable:$true] %s23_s12 }
   0x5   :  { %s728_s13 = scalar_lea.vmem %s36_s10, 1024  ;;  %p733_p1 = scmp.lt.s32.totalorder %s36_s10, %s36_s10 }
   0x6   :  { %p729_p0 = scmp.ne.s32.totalorder %s36_s10, %s728_s13  ;;  %p734_p2 = scmp.lt.s32.totalorder %s728_s13, %s728_s13 }
   0x8   :  { %p735_p3 = por %p734_p2, %p733_p1 }
   0xa   :  { %p736_p4 = pnand %p735_p3, %p729_p0 }
   0xc   :  { %739 = shalt.err (!%p736_p4)
}
   0xd   :  { %s830_s14 = smov 64   ;;  %s831_s15 = smov 4  }
   0xe   :  { %41 = dma.hbm_to_vmem [thread:$0]  %s970_s1, 1024, %s36_s10, [#allocation6], %s830_s14, %s830_s14, %s831_s15  }
   0xf   :  { %s748_s18 = scalar_lea.vmem %s24_s12, 128  ;;  %p753_p6 = scmp.lt.s32.totalorder %s24_s12, %s24_s12 }
  0x10   :  { %p749_p5 = scmp.ne.s32.totalorder %s24_s12, %s748_s18  ;;  %p754_p7 = scmp.lt.s32.totalorder %s748_s18, %s748_s18 }
  0x12   :  { %p755_p8 = por %p754_p7, %p753_p6 }
  0x14   :  { %p756_p9 = pnand %p755_p8, %p749_p5 }
  0x16   :  { %759 = shalt.err (!%p756_p9)
}
  0x17   :  { %29 = dma.hbm_to_vmem [thread:$0]  %s969_s0, 128, %s24_s12, [#allocation3], %s830_s14, %s830_s14, %s831_s15  }
  0x18   :  { %s832_s21 = smov [#allocation7]   ;;  %s833_s23 = smov [#allocation8]  }
  0x19   :  { %s51_s22 = sshll.u32 %s832_s21, 4  ;;  %s67_s24 = sshll.u32 %s833_s23, 4  ;;  %s52_s22 = int_to_ptr.vmem [resolvable:$true] %s51_s22  ;;  %s68_s24 = int_to_ptr.vmem [resolvable:$true] %s67_s24 }
  0x1a   :  { %s768_s1 = scalar_lea.vmem %s52_s22, 1024  ;;  %p773_p11 = scmp.lt.s32.totalorder %s52_s22, %s52_s22 }
  0x1b   :  { %p769_p10 = scmp.ne.s32.totalorder %s52_s22, %s768_s1  ;;  %p774_p12 = scmp.lt.s32.totalorder %s768_s1, %s768_s1 }
  0x1d   :  { %p775_p13 = por %p774_p12, %p773_p11 }
  0x1f   :  { %p776_p0 = pnand %p775_p13, %p769_p10 }
  0x21   :  { %779 = shalt.err (!%p776_p0)
}
  0x22   :  { %57 = dma.hbm_to_vmem [thread:$0]  %s973_s4, 1024, %s52_s22, [#allocation6], %s830_s14, %s830_s14, %s831_s15  }
  0x23   :  { %s788_s0 = scalar_lea.vmem %s68_s24, 1024  ;;  %p793_p2 = scmp.lt.s32.totalorder %s68_s24, %s68_s24 }
  0x24   :  { %p789_p1 = scmp.ne.s32.totalorder %s68_s24, %s788_s0  ;;  %p794_p3 = scmp.lt.s32.totalorder %s788_s0, %s788_s0 }
  0x26   :  { %p795_p4 = por %p794_p3, %p793_p2 }
  0x28   :  { %p796_p5 = pnand %p795_p4, %p789_p1 }
  0x2a   :  { %799 = shalt.err (!%p796_p5)
}
  0x2b   :  { %73 = dma.hbm_to_vmem [thread:$0]  %s976_s7, 1024, %s68_s24, [#allocation9], %s830_s14, %s830_s14, %s831_s15  }
  0x2c   :  { %820 = dma.done.wait [#allocation3], 128  }
  0x2d   :  { %821 = vsyncadd [#allocation3], 4294967168 }
  0x2e   :  { %822 = dma.done.wait [#allocation6], 2048  }
  0x2f   :  { %823 = vsyncadd [#allocation6], 4294965248 }
  0x30   :  { %824 = dma.done.wait [#allocation9], 1024  }
  0x31   :  { %825 = vsyncadd [#allocation9], 4294966272  ;;  %v834_v0 = vmov 0.0   ;;  %vm835_vm0 = vmmov 0   ;;  %v683_v1 = vld [vmem:[#allocation5 + $0x38] sm:$0xff]   ;;  %v684_v2 = vld [vmem:[#allocation5 + $0x30] sm:$0xff]   ;;  %v230_v43 = vlaneseq }
  0x32   :  { %612 = vmatprep.subr.bf16.mxu0 %v834_v0  ;;  %628 = vmatprep.mubr.msk.bf16.mxu0 %vm835_vm0, %v834_v0  ;;  %v685_v3 = vld [vmem:[#allocation5 + $0x28] sm:$0xff]   ;;  %v686_v4 = vld [vmem:[#allocation5 + $0x20] sm:$0xff]   ;;  %v687_v5 = vld [vmem:[#allocation5 + $0x18] sm:$0xff]  }
  0x33   :  { %632 = vmatprep.subr.bf16.mxu1 %v834_v0  ;;  %648 = vmatprep.mubr.msk.bf16.mxu1 %vm835_vm0, %v834_v0  ;;  %v688_v6 = vld [vmem:[#allocation5 + $0x10] sm:$0xff]   ;;  %v689_v7 = vld [vmem:[#allocation5 + $0x8] sm:$0xff]   ;;  %v690_v8 = vld [vmem:[#allocation5] sm:$0xff]   ;;  %v231_v44 = vshrl.u32 %v230_v43, 7 }
  0x34   :  { %613 = vmatpush3.bf16.msra.mxu0 %v683_v1  ;;  %v691_v9 = vld [vmem:[#allocation2] sm:$0xff]   ;;  %v693_v11 = vld [vmem:[#allocation7 + $0x30] sm:$0xff]   ;;  %v694_v12 = vld [vmem:[#allocation7 + $0x28] sm:$0xff]  }
  0x35   :  { %614 = vmatprep.subr.bf16.mxu0 %v834_v0  ;;  %v692_v10 = vld [vmem:[#allocation7 + $0x38] sm:$0xff]   ;;  %v695_v13 = vld [vmem:[#allocation7 + $0x20] sm:$0xff]   ;;  %v697_v15 = vld [vmem:[#allocation7 + $0x10] sm:$0xff]   ;;  %v940_v46 = vsub.s32 0, %v231_v44 }
  0x36   :  { %633 = vmatpush3.bf16.msra.mxu1 %v692_v10  ;;  %v696_v14 = vld [vmem:[#allocation7 + $0x18] sm:$0xff]   ;;  %v698_v16 = vld [vmem:[#allocation7 + $0x8] sm:$0xff]   ;;  %v699_v17 = vld [vmem:[#allocation7] sm:$0xff]  }
  0x37   :  { %634 = vmatprep.subr.bf16.mxu1 %v834_v0  ;;  %v107_v45 = vld [vmem:[%s971_s2] sm:$0x1]  ;;  %v701_v62 = vld [vmem:[#allocation8 + $0x30] sm:$0xff]   ;;  %v702_v63 = vld [vmem:[#allocation8 + $0x28] sm:$0xff]  }
  0x38   :  { %615 = vmatpush3.bf16.msra.mxu0 %v684_v2  ;;  %v108_v49 = vld [vmem:[%s972_s3] sm:$0x1]  ;;  %v703_v1 = vld [vmem:[#allocation8 + $0x20] sm:$0xff]  }
  0x39   :  { %616 = vmatprep.subr.bf16.mxu0 %v834_v0  ;;  %v700_v61 = vld [vmem:[#allocation8 + $0x38] sm:$0xff]  }
  0x3a   :  { %635 = vmatpush3.bf16.msra.mxu1 %v693_v11  ;;  %v704_v2 = vld [vmem:[#allocation8 + $0x18] sm:$0xff]  }
  0x3b   :  { %636 = vmatprep.subr.bf16.mxu1 %v834_v0 }
  0x3c   :  { %617 = vmatpush3.bf16.msra.mxu0 %v685_v3  ;;  %v705_v3 = vld [vmem:[#allocation8 + $0x10] sm:$0xff]  }
  0x3d   :  { %618 = vmatprep.subr.bf16.mxu0 %v834_v0 }
  0x3e   :  { %637 = vmatpush3.bf16.msra.mxu1 %v694_v12 }
  0x3f   :  { %638 = vmatprep.subr.bf16.mxu1 %v834_v0 }
  0x40   :  { %619 = vmatpush3.bf16.msra.mxu0 %v686_v4  ;;  %v706_v4 = vld [vmem:[#allocation8 + $0x8] sm:$0xff]  }
  0x41   :  { %620 = vmatprep.subr.bf16.mxu0 %v834_v0 }
  0x42   :  { %639 = vmatpush3.bf16.msra.mxu1 %v695_v13 }
  0x43   :  { %640 = vmatprep.subr.bf16.mxu1 %v834_v0 }
  0x44   :  { %621 = vmatpush3.bf16.msra.mxu0 %v687_v5  ;;  %v707_v5 = vld [vmem:[#allocation8] sm:$0xff]  }
  0x45   :  { %622 = vmatprep.subr.bf16.mxu0 %v834_v0 }
  0x46   :  { %641 = vmatpush3.bf16.msra.mxu1 %v696_v14 }
  0x47   :  { %642 = vmatprep.subr.bf16.mxu1 %v834_v0 }
  0x48   :  { %623 = vmatpush3.bf16.msra.mxu0 %v688_v6 }
  0x49   :  { %624 = vmatprep.subr.bf16.mxu0 %v834_v0 }
  0x4a   :  { %643 = vmatpush3.bf16.msra.mxu1 %v697_v15 }
  0x4b   :  { %644 = vmatprep.subr.bf16.mxu1 %v834_v0 }
  0x4c   :  { %625 = vmatpush3.bf16.msra.mxu0 %v689_v7 }
  0x4d   :  { %626 = vmatprep.subr.bf16.mxu0 %v834_v0 }
  0x4e   :  { %645 = vmatpush3.bf16.msra.mxu1 %v698_v16 }
  0x4f   :  { %646 = vmatprep.subr.bf16.mxu1 %v834_v0 }
  0x50   :  { %627 = vmatpush3.bf16.msra.mxu0 %v690_v8 }
  0x51   :  { %652 = vmatprep.subr.bf16.mxu0 %v834_v0 }
  0x52   :  { %647 = vmatpush3.bf16.msra.mxu1 %v699_v17 }
  0x53   :  { %629 = vmatmul.mubr.bf16.vlgmr.msra.gmra.mxu0 %v691_v9 }
  0x54   :  { %668 = vmatprep.mubr.msk.bf16.mxu0 %vm835_vm0, %v834_v0  ;;  %653 = vmatpush3.bf16.msra.mxu0 %v700_v61 }
  0x55   :  { %654 = vmatprep.subr.bf16.mxu0 %v834_v0 }
  0x58   :  { %655 = vmatpush3.bf16.msra.mxu0 %v701_v62 }
  0x59   :  { %656 = vmatprep.subr.bf16.mxu0 %v834_v0 }
  0x5c   :  { %657 = vmatpush3.bf16.msra.mxu0 %v702_v63 }
  0x5d   :  { %658 = vmatprep.subr.bf16.mxu0 %v834_v0 }
  0x60   :  { %659 = vmatpush3.bf16.msra.mxu0 %v703_v1 }
  0x61   :  { %660 = vmatprep.subr.bf16.mxu0 %v834_v0 }
  0x64   :  { %661 = vmatpush3.bf16.msra.mxu0 %v704_v2 }
  0x65   :  { %662 = vmatprep.subr.bf16.mxu0 %v834_v0 }
  0x68   :  { %663 = vmatpush3.bf16.msra.mxu0 %v705_v3 }
  0x69   :  { %664 = vmatprep.subr.bf16.mxu0 %v834_v0 }
  0x6c   :  { %665 = vmatpush3.bf16.msra.mxu0 %v706_v4 }
  0x6d   :  { %666 = vmatprep.subr.bf16.mxu0 %v834_v0 }
  0x70   :  { %667 = vmatpush3.bf16.msra.mxu0 %v707_v5 }
 0x113   :  { %v197_v18 = vpop.f32.mrf.mxu0 }
 0x114   :  { %v212_v21 = vmul.f32 %v197_v18, %v197_v18 }
 0x115   :  { %v630_v19 = vpop.f32.mrf.mxu0 }
 0x117   :  { %v200_v20 = vpop.f32.mrf.mxu0 }
 0x118   :  { %v204_v22 = vadd.f32 %v200_v20, %v197_v18  ;;  %v213_v23 = vmul.f32 %v200_v20, %v200_v20 }
 0x119   :  { %v631_v24 = vpop.f32.mrf.mxu0 }
 0x11a   :  { %v205_v25 = vrot.slane %v204_v22, 4  ;;  %v214_v26 = vadd.f32 %v213_v23, %v212_v21 }
 0x11c   :  { %v206_v27 = vadd.f32 %v205_v25, %v204_v22  ;;  %v215_v28 = vrot.slane %v214_v26, 4 }
 0x11e   :  { %v207_v29 = vrot.slane %v206_v27, 2  ;;  %v216_v30 = vadd.f32 %v215_v28, %v214_v26 }
 0x120   :  { %v208_v31 = vadd.f32 %v207_v29, %v206_v27  ;;  %v217_v32 = vrot.slane %v216_v30, 2 }
 0x122   :  { %v209_v33 = vrot.slane %v208_v31, 1  ;;  %v218_v34 = vadd.f32 %v217_v32, %v216_v30  ;;  %v264_v30 = vld [vmem:[%s974_s5] sm:$0x1] }
 0x124   :  { %v210_v35 = vadd.f32 %v209_v33, %v208_v31  ;;  %v219_v36 = vrot.slane %v218_v34, 1  ;;  %v265_v33 = vld [vmem:[%s975_s6] sm:$0x1]  ;;  %s836_s6 = smov [#allocation10]  }
 0x126   :  { %v211_v37 = vmul.f32 0.0625, %v210_v35  ;;  %v220_v38 = vadd.f32 %v219_v36, %v218_v34 }
 0x128   :  { %v221_v39 = vmul.f32 0.0625, %v220_v38  ;;  %v222_v40 = vmul.f32 %v211_v37, %v211_v37 }
 0x12a   :  { %v223_v41 = vsub.f32 %v221_v39, %v222_v40 }
 0x12c   :  { %v224_v42 = vadd.f32 1e-05, %v223_v41 }
 0x12e   :  { %708 = vrsqrt.f32 %v224_v42 }
 0x13b   :  { %v709_v47 = vpop.eup %708 }
 0x13c   :  { %v226_v48 = vmul.f32 %v709_v47, %v107_v45  ;;  %v512_v47 = vand.u32 127, %v230_v43 }
 0x13e   :  { %v227_v50 = vmul.f32 %v226_v48, %v211_v37  ;;  %v233_v51 = vrot.slane %v226_v48, %v940_v46  ;;  %v576_v48 = vld [vmem:[%s977_s8] ss:$0 sm:$0xff]  ;;  %vm513_vm1 = vcmp.lt.s32.totalorder %v512_v47, 10  ;;  %s545_s8 = sshll.u32 %s836_s6, 4  ;;  %s546_s8 = int_to_ptr.vmem [resolvable:$true] %s545_s8 }
 0x13f   :  { %s800_s13 = scalar_lea.vmem %s546_s8, 256  ;;  %p805_p7 = scmp.lt.s32.totalorder %s546_s8, %s546_s8 }
 0x140   :  { %v228_v52 = vsub.f32 %v108_v49, %v227_v50  ;;  %v235_v53 = vmul.f32 %v233_v51, %v197_v18  ;;  %v236_v54 = vmul.f32 %v233_v51, %v200_v20  ;;  %p801_p6 = scmp.ne.s32.totalorder %s546_s8, %s800_s13  ;;  %p806_p8 = scmp.lt.s32.totalorder %s800_s13, %s800_s13 }
 0x142   :  { %v241_v55 = vrot.slane %v228_v52, %v940_v46  ;;  %p807_p9 = por %p806_p8, %p805_p7 }
 0x144   :  { %v244_v56 = vadd.f32 %v241_v55, %v236_v54  ;;  %v243_v57 = vadd.f32 %v241_v55, %v235_v53  ;;  %p808_p10 = pnand %p807_p9, %p801_p6 }
 0x146   :  { %v245_v58 = vmax.f32 %v243_v57, 0.0  ;;  %v246_v59 = vmax.f32 %v244_v56, 0.0 }
 0x148   :  { %v247_v60 = vpack.c.bf16 %v246_v59, %v245_v58 }
 0x14a   :  { %649 = vmatmul.mubr.bf16.vlgmr.msra.gmra.mxu1 %v247_v60 }
 0x20a   :  { %v348_v6 = vpop.f32.mrf.mxu1 }
 0x20b   :  { %v363_v9 = vmul.f32 %v348_v6, %v348_v6 }
 0x20c   :  { %v650_v7 = vpop.f32.mrf.mxu1 }
 0x20e   :  { %v351_v8 = vpop.f32.mrf.mxu1 }
 0x20f   :  { %v355_v10 = vadd.f32 %v351_v8, %v348_v6  ;;  %v364_v11 = vmul.f32 %v351_v8, %v351_v8 }
 0x210   :  { %v651_v12 = vpop.f32.mrf.mxu1 }
 0x211   :  { %v356_v13 = vrot.slane %v355_v10, 4  ;;  %v365_v14 = vadd.f32 %v364_v11, %v363_v9 }
 0x213   :  { %v357_v15 = vadd.f32 %v356_v13, %v355_v10  ;;  %v366_v16 = vrot.slane %v365_v14, 4 }
 0x215   :  { %v358_v17 = vrot.slane %v357_v15, 2  ;;  %v367_v18 = vadd.f32 %v366_v16, %v365_v14 }
 0x217   :  { %v359_v19 = vadd.f32 %v358_v17, %v357_v15  ;;  %v368_v20 = vrot.slane %v367_v18, 2 }
 0x219   :  { %v360_v21 = vrot.slane %v359_v19, 1  ;;  %v369_v22 = vadd.f32 %v368_v20, %v367_v18 }
 0x21b   :  { %v361_v0 = vadd.f32 %v360_v21, %v359_v19  ;;  %v370_v23 = vrot.slane %v369_v22, 1 }
 0x21d   :  { %v362_v24 = vmul.f32 0.0625, %v361_v0  ;;  %v371_v25 = vadd.f32 %v370_v23, %v369_v22 }
 0x21f   :  { %v372_v26 = vmul.f32 0.0625, %v371_v25  ;;  %v373_v27 = vmul.f32 %v362_v24, %v362_v24 }
 0x221   :  { %v374_v28 = vsub.f32 %v372_v26, %v373_v27 }
 0x223   :  { %v375_v29 = vadd.f32 1e-05, %v374_v28 }
 0x225   :  { %710 = vrsqrt.f32 %v375_v29 }
 0x232   :  { %v711_v31 = vpop.eup %710 }
 0x233   :  { %v377_v32 = vmul.f32 %v711_v31, %v264_v30 }
 0x235   :  { %v378_v34 = vmul.f32 %v377_v32, %v362_v24  ;;  %v384_v35 = vrot.slane %v377_v32, %v940_v46 }
 0x237   :  { %v379_v36 = vsub.f32 %v265_v33, %v378_v34  ;;  %v386_v37 = vmul.f32 %v384_v35, %v348_v6  ;;  %v387_v38 = vmul.f32 %v384_v35, %v351_v8 }
 0x239   :  { %v392_v39 = vrot.slane %v379_v36, %v940_v46 }
 0x23b   :  { %v394_v40 = vadd.f32 %v392_v39, %v386_v37  ;;  %v395_v41 = vadd.f32 %v392_v39, %v387_v38 }
 0x23d   :  { %v397_v42 = vmax.f32 %v395_v41, 0.0  ;;  %v396_v44 = vmax.f32 %v394_v40, 0.0 }
 0x23f   :  { %v398_v45 = vpack.c.bf16 %v397_v42, %v396_v44 }
 0x241   :  { %669 = vmatmul.mubr.bf16.vlgmr.msra.gmra.mxu0 %v398_v45 }
 0x301   :  { %v504_v49 = vpop.f32.mrf.mxu0 }
 0x302   :  { %v505_v50 = vadd.f32 %v576_v48, %v504_v49 }
 0x303   :  { %v670_v51 = vpop.f32.mrf.mxu0 }
 0x304   :  { %v516_v52 = vsel %vm513_vm1, %v505_v50, -1e+30 }
 0x305   :  { %518 = vmax.xlane.f32.xlu0 %v516_v52  ;;  %v507_v53 = vpop.f32.mrf.mxu0 }
 0x306   :  { %v508_v46 = vadd.f32 %v576_v48, %v507_v53 }
 0x307   :  { %v671_v54 = vpop.f32.mrf.mxu0 }
 0x308   :  { %v517_v55 = vsel %vm513_vm1, %v508_v46, -1e+30 }
 0x309   :  { %520 = vmax.xlane.f32.xlu0 %v517_v55 }
 0x38e   :  { %v519_v56 = vpop.xlane.xlu0 %518 }
 0x38f   :  { %v522_v57 = vsub.f32 %v516_v52, %v519_v56 }
 0x391   :  { %v524_v58 = vmul.f32 1.442695, %v522_v57 }
 0x392   :  { %v521_v59 = vpop.xlane.xlu0 %520 }
 0x393   :  { %v523_v43 = vsub.f32 %v517_v55, %v521_v59  ;;  %712 = vpow2.f32 %v524_v58 }
 0x395   :  { %v526_v60 = vmul.f32 1.442695, %v523_v43 }
 0x397   :  { %714 = vpow2.f32 %v526_v60 }
 0x3a0   :  { %v713_v61 = vpop.eup %712 }
 0x3a1   :  { %528 = vadd.xlane.f32.xlu1 %v713_v61 }
 0x3a4   :  { %v715_v62 = vpop.eup %714 }
 0x3a5   :  { %530 = vadd.xlane.f32.xlu1 %v715_v62 }
 0x42a   :  { %v529_v63 = vpop.xlane.xlu1 %528 }
 0x42b   :  { %716 = vlog2.f32 %v529_v63 }
 0x42e   :  { %v531_v1 = vpop.xlane.xlu1 %530 }
 0x42f   :  { %718 = vlog2.f32 %v531_v1 }
 0x438   :  { %v717_v2 = vpop.eup %716 }
 0x439   :  { %v533_v3 = vmul.f32 0.6931472, %v717_v2 }
 0x43b   :  { %v536_v4 = vsub.f32 %v522_v57, %v533_v3 }
 0x43c   :  { %v719_v5 = vpop.eup %718 }
 0x43d   :  { %538 = vst [vmem:[#allocation10] sm:$0xff] %v536_v4  ;;  %v535_v6 = vmul.f32 0.6931472, %v719_v5 }
 0x43f   :  { %v537_v7 = vsub.f32 %v523_v43, %v535_v6 }
 0x441   :  { %539 = vst [vmem:[#allocation10 + $0x8] sm:$0xff] %v537_v7 }
 0x442   :  { %811 = shalt.err (!%p808_p10)
}
 0x443   :  { %s837_s14 = smov 128   ;;  %s838_s15 = smov 8  }
 0x444   :  { %551 = dma.vmem_to_hbm [thread:$0]  %s546_s8, 256, %s978_s9, [#allocation4], %s837_s14, %s837_s14, %s838_s15  }
 0x445   :  { %826 = dma.done.wait [#allocation4], 256  }
 0x446   :  { %827 = vsyncadd [#allocation4], 4294967040 }
 0x447   :  { %555 = vsyncpa [#allocation3], 1 }
 0x448   :  { %556 = vsyncpa [#allocation6], 1 }
 0x449   :  { %557 = vsyncpa [#allocation9], 1 }
 0x44a   :  { %558 = vsyncpa [#allocation4], 1 }

</bundles_post_ra>
